<compile_context>
chip_gen: v6e
topology: v6e:2x2x1
jax: 0.10.0
libtpu: 0.0.40
codegen_flags: <defaults>
</compile_context>

<pallas_src>
from typing import Dict, List, Tuple

import jax
import jax.numpy as jnp
import numpy as np
from jax.experimental import pallas as pl
from jax.experimental.pallas import tpu as pltpu


def _round_up(x: int, m: int) -> int:
    return ((x + m - 1) // m) * m


def _cdiv(a: int, b: int) -> int:
    return -(-a // b)


# --------------------------------------------------------------------------
# Pallas kernel: fused multi-feature embedding (bag-sum) via multi-hot matmul
# --------------------------------------------------------------------------
def _fused_embedding_kernel(idx_ref, table_ref, out_ref):
    # idx_ref  : (TN, G) int32    -- indices already clamped + offset by row base
    # table_ref: (Cp, Dp) bf16    -- block-diagonal packed table (resident in VMEM)
    # out_ref  : (TN, Dp)         -- lane-dense (Dp % 128 == 0)
    ids = idx_ref[...]                                         # (TN, G)
    g = ids.shape[1]
    cp = table_ref.shape[0]

    # Lean multi-hot: (1, Cp) iota broadcast; the first compare initializes the
    # accumulator (no (TN, Cp) zero-fill, no (TN, Cp) iota tensor).
    cats = jax.lax.broadcasted_iota(jnp.int32, (1, cp), 1)     # (1, Cp)
    multihot = (ids[:, 0:1] == cats).astype(jnp.float32)       # (TN, Cp)
    for gi in range(1, g):                                     # small static G, unrolled
        multihot = multihot + (ids[:, gi:gi + 1] == cats).astype(jnp.float32)
    # TODO(synk): packed int16 compares + bf16 accumulate here on v6e/v7x (not v5e).

    # bf16 x bf16 at DEFAULT precision -> single MXU pass, f32 accumulation.
    # Counts (<= G) are exact in bf16; block-diagonal table => each slot's one-hot only
    # touches its own feature's rows/columns.
    acc = jnp.dot(multihot.astype(jnp.bfloat16), table_ref[...],
                  preferred_element_type=jnp.float32)
    out_ref[...] = acc.astype(out_ref.dtype)


def _build_fused_call(pad_n, tile, g, cp, dp, out_dtype, vmem_limit_bytes, cost,
                      table_buffer_count):
    table_kwargs = {}
    if table_buffer_count is not None:
        # Grid-invariant operand: single-buffer it (halves its VMEM footprint and
        # guarantees no redundant re-DMA per grid step).
        table_kwargs["pipeline_mode"] = pl.Buffered(table_buffer_count)
    return pl.pallas_call(
        _fused_embedding_kernel,
        out_shape=jax.ShapeDtypeStruct((pad_n, dp), out_dtype),
        grid_spec=pltpu.PrefetchScalarGridSpec(
            num_scalar_prefetch=0,
            grid=(pad_n // tile,),
            in_specs=[
                pl.BlockSpec((tile, g), lambda i: (i, 0)),
                pl.BlockSpec((cp, dp), lambda i: (0, 0), **table_kwargs),
            ],
            out_specs=pl.BlockSpec((tile, dp), lambda i: (i, 0)),
        ),
        compiler_params=pltpu.CompilerParams(
            dimension_semantics=("parallel",),
            vmem_limit_bytes=vmem_limit_bytes),
        cost_estimate=cost,
    )


def fused_embedding_bag(indices: jnp.ndarray, packed_table: jnp.ndarray,
                        tile_n: int = 512,
                        out_dtype=jnp.float32) -> jnp.ndarray:
    """indices: (N, G) int32 (clamped + row-offset), packed_table: (Cp, Dp) bf16.

    Returns (N, Dp) in out_dtype (lane-dense, Dp % 128 == 0)."""
    n, g = indices.shape
    cp, dp = packed_table.shape

    # Row tile: as large as allowed, but capped so the grid has >= 2 steps whenever
    # there are > 8 rows -> the "parallel" axis can shard across v7x's 2 TensorCores.
    tile = max(8, min(tile_n, _round_up(_cdiv(max(n, 1), 2), 8)))
    pad_n = _round_up(max(n, tile), tile)

    idx_p = jnp.pad(indices.astype(jnp.int32), ((0, pad_n - n), (0, 0)))

    out_bytes = jnp.dtype(out_dtype).itemsize
    tbl_bytes = jnp.dtype(packed_table.dtype).itemsize
    # VMEM budget: idx (2 bufs) + table (<=2 bufs) + f32 multihot + bf16 copy
    #              + f32 matmul result + out (2 bufs); 2x slack + headroom, clamped so
    #              it stays valid on v7x's 64 MiB physical VMEM.
    need = (2 * tile * g * 4
            + 2 * cp * dp * tbl_bytes
            + tile * cp * (4 + 2)
            + tile * dp * 4
            + 2 * tile * dp * out_bytes)
    vmem_limit = int(min(max(2 * need + (4 << 20), 32 << 20), 48 << 20))

    cost = pl.CostEstimate(
        flops=2 * pad_n * cp * dp,
        transcendentals=0,
        bytes_accessed=idx_p.size * 4 + cp * dp * tbl_bytes + pad_n * dp * out_bytes)

    try:
        out = _build_fused_call(pad_n, tile, g, cp, dp, out_dtype, vmem_limit, cost,
                                table_buffer_count=1)(idx_p, packed_table)
    except Exception:
        # pipeline_mode=pl.Buffered(1) not supported by this Pallas build:
        # fall back to the default double-buffered table spec (identical results).
        out = _build_fused_call(pad_n, tile, g, cp, dp, out_dtype, vmem_limit, cost,
                                table_buffer_count=None)(idx_p, packed_table)
    return out[:n]


# --------------------------------------------------------------------------
# MultiEmbedding in JAX, mirroring the PyTorch module's __init__ / forward
# --------------------------------------------------------------------------
class MultiEmbedding:
    def __init__(self,
                 embedding_sizes: Dict[str, Tuple[int, int]],
                 embedding_paddings: List[str],
                 max_embedding_size: int = None,
                 categorical_groups: Dict[str, List[str]] = {},
                 seed: int = 0,
                 out_dtype=jnp.float32):
        self.embedding_sizes = {k: list(v) for k, v in embedding_sizes.items()}
        self.categorical_groups = categorical_groups
        self.embedding_paddings = embedding_paddings
        self.max_embedding_size = max_embedding_size
        self.out_dtype = out_dtype
        self._init_embeddings(seed)
        self._build_packed()

    def _init_embeddings(self, seed: int):
        self.tables: Dict[str, jnp.ndarray] = {}
        key = jax.random.PRNGKey(seed)
        for name in self.embedding_sizes.keys():
            num_cat, emb_dim = self.embedding_sizes[name]
            if self.max_embedding_size is not None:
                emb_dim = min(emb_dim, self.max_embedding_size)
            self.embedding_sizes[name][1] = emb_dim

            key, sub = jax.random.split(key)
            table = jax.random.normal(sub, (num_cat, emb_dim), jnp.float32)
            # Weights are held at bf16 precision (kernel runs a 1-pass bf16 MXU matmul);
            # keep the canonical copy bf16-rounded so kernel == reference.
            table = table.astype(jnp.bfloat16).astype(jnp.float32)
            # nn.Embedding(padding_idx=0) initializes row 0 to zeros.
            if (name not in self.categorical_groups) and (name in self.embedding_paddings):
                table = table.at[0].set(0.0)
            self.tables[name] = table

    def _build_packed(self):
        """Pack all tables block-diagonally: rows = sum C_f, cols = sum D_f (pad to 128)."""
        self.feature_order = list(self.tables.keys())
        self.row_bases: Dict[str, int] = {}
        self.col_bases: Dict[str, int] = {}
        row, col = 0, 0
        for name in self.feature_order:
            c, d = self.embedding_sizes[name]
            self.row_bases[name] = row
            self.col_bases[name] = col
            row += c
            col += d
        c_pad = _round_up(max(row, 8), 8)
        d_pad = _round_up(max(col, 128), 128)       # lane-dense output width

        packed = jnp.zeros((c_pad, d_pad), jnp.float32)
        for name in self.feature_order:
            c, d = self.embedding_sizes[name]
            rb, cb = self.row_bases[name], self.col_bases[name]
            packed = packed.at[rb:rb + c, cb:cb + d].set(self.tables[name])
        self.packed_table = packed.astype(jnp.bfloat16)   # half the VMEM/HBM bytes

        # One "slot" per index column fed to the kernel: (input key, row base, num cats).
        slots = []
        for name in self.feature_order:
            c = self.embedding_sizes[name][0]
            if name in self.categorical_groups:
                for m in self.categorical_groups[name]:
                    slots.append((m, self.row_bases[name], c))
            else:
                slots.append((name, self.row_bases[name], c))
        self.slots = slots

    def __call__(self, x: Dict[str, jnp.ndarray], return_packed: bool = False):
        # Build a single (B, T, G_total) index tensor with per-feature clamping + row
        # offsets, then ONE fused Pallas call for every feature.
        cols = []
        for key_name, base, num_cat in self.slots:
            v = x[key_name].astype(jnp.int32)
            if v.ndim <= 2:
                v = v[..., None]                               # (B, T) -> (B, T, 1)
            else:
                v = v.reshape(v.shape[0], v.shape[1], -1)      # group member (B, T, k)
            v = jnp.clip(v, 0, num_cat - 1)                    # match jnp.take clamping
            cols.append(v + base)
        idx = jnp.concatenate(cols, axis=-1)                   # (B, T, G_total)
        b, t, g = idx.shape

        y = fused_embedding_bag(idx.reshape(-1, g), self.packed_table,
                                out_dtype=self.out_dtype)      # (B*T, D_pad)

        if return_packed:
            # Lane-dense packed slab + column map: avoids F strided slice copies when
            # the consumer (e.g. TFT) re-concatenates the embeddings anyway.
            colmap = {name: (self.col_bases[name], self.embedding_sizes[name][1])
                      for name in self.feature_order}
            return y.reshape(b, t, -1), colmap

        input_vectors = {}
        for name in self.feature_order:
            d = self.embedding_sizes[name][1]
            cb = self.col_bases[name]
            input_vectors[name] = y[:, cb:cb + d].reshape(b, t, d)
        return input_vectors


# --------------------------------------------------------------------------
# Pure-JAX reference for a sanity check
# --------------------------------------------------------------------------
def _reference(module: MultiEmbedding, x):
    out = {}
    for name, table in module.tables.items():
        if name in module.categorical_groups:
            cat = jnp.concatenate(
                [x[m].astype(jnp.int32) for m in module.categorical_groups[name]],
                axis=-1)
            out[name] = jnp.take(table, cat, axis=0).sum(axis=-2)
        else:
            out[name] = jnp.take(table, x[name].astype(jnp.int32), axis=0)
    return out


if __name__ == "__main__":
    B, T = 2, 8

    embedding_sizes = {
        "weekday": (8, 6),
        "holiday": (3, 4),
        "special_days": (11, 6),
    }
    embedding_paddings = ["holiday"]
    categorical_groups = {"special_days": ["day_a", "day_b", "day_c"]}
    max_embedding_size = 5  # clips 6 -> 5

    module = MultiEmbedding(embedding_sizes, embedding_paddings,
                            max_embedding_size, categorical_groups, seed=0)

    key = jax.random.PRNGKey(0)
    k1, k2, k3, k4, k5 = jax.random.split(key, 5)
    x = {
        "weekday": jax.random.randint(k1, (B, T), 0, 8, jnp.int32),
        "holiday": jax.random.randint(k2, (B, T), 0, 3, jnp.int32),
        "day_a": jax.random.randint(k3, (B, T, 1), 0, 11, jnp.int32),
        "day_b": jax.random.randint(k4, (B, T, 1), 0, 11, jnp.int32),
        "day_c": jax.random.randint(k5, (B, T, 1), 0, 11, jnp.int32),
    }

    out = module(x)
    out = jax.tree_util.tree_map(jax.block_until_ready, out)

    ref = _reference(module, x)
    for name in out:
        np.testing.assert_allclose(np.asarray(out[name]), np.asarray(ref[name]),
                                   rtol=1e-5, atol=1e-5)
        assert out[name].shape == (B, T, module.embedding_sizes[name][1])

    print("KERNEL_OK")
</pallas_src>

<mosaic_0001>
module attributes {stable_mosaic.version = 11 : i64} {
  func.func @_fused_embedding_kernel(%arg0: i32, %arg1: memref<8x5xi32, #tpu.memory_space<vmem>>, %arg2: memref<24x128xbf16, #tpu.memory_space<vmem>>, %arg3: memref<8x128xf32, #tpu.memory_space<vmem>>) attributes {dimension_semantics = [#tpu.dimension_semantics<parallel>], iteration_bounds = array<i64: 2>, scalar_prefetch = 0 : i64, scratch_operands = 0 : i64, tpu.core_type = #tpu.core_type<tc>, window_params = [{transform_indices = @transform_0, window_bounds = array<i64: 8, 5>}, {pipeline_mode = #tpu.pipeline_mode<synchronous>, transform_indices = @transform_1, window_bounds = array<i64: 24, 128>}, {transform_indices = @transform_2, window_bounds = array<i64: 8, 128>}]} {
    %c0 = arith.constant 0 : index
    %c0_0 = arith.constant 0 : index
    %0 = vector.load %arg1[%c0, %c0_0] : memref<8x5xi32, #tpu.memory_space<vmem>>, vector<8x5xi32>
    %1 = tpu.iota {dimensions = array<i32: 1>} : vector<1x24xi32>
    %2 = vector.extract_strided_slice %0 {offsets = [0, 0], sizes = [8, 1], strides = [1, 1]} : vector<8x5xi32> to vector<8x1xi32>
    %3 = vector.broadcast %2 : vector<8x1xi32> to vector<8x24xi32>
    %4 = vector.broadcast %1 : vector<1x24xi32> to vector<8x24xi32>
    %5 = arith.cmpi eq, %3, %4 : vector<8x24xi32>
    %6 = arith.extui %5 : vector<8x24xi1> to vector<8x24xi32>
    %7 = arith.sitofp %6 : vector<8x24xi32> to vector<8x24xf32>
    %8 = vector.extract_strided_slice %0 {offsets = [0, 1], sizes = [8, 1], strides = [1, 1]} : vector<8x5xi32> to vector<8x1xi32>
    %9 = vector.broadcast %8 : vector<8x1xi32> to vector<8x24xi32>
    %10 = vector.broadcast %1 : vector<1x24xi32> to vector<8x24xi32>
    %11 = arith.cmpi eq, %9, %10 : vector<8x24xi32>
    %12 = arith.extui %11 : vector<8x24xi1> to vector<8x24xi32>
    %13 = arith.sitofp %12 : vector<8x24xi32> to vector<8x24xf32>
    %14 = arith.addf %7, %13 : vector<8x24xf32>
    %15 = vector.extract_strided_slice %0 {offsets = [0, 2], sizes = [8, 1], strides = [1, 1]} : vector<8x5xi32> to vector<8x1xi32>
    %16 = vector.broadcast %15 : vector<8x1xi32> to vector<8x24xi32>
    %17 = vector.broadcast %1 : vector<1x24xi32> to vector<8x24xi32>
    %18 = arith.cmpi eq, %16, %17 : vector<8x24xi32>
    %19 = arith.extui %18 : vector<8x24xi1> to vector<8x24xi32>
    %20 = arith.sitofp %19 : vector<8x24xi32> to vector<8x24xf32>
    %21 = arith.addf %14, %20 : vector<8x24xf32>
    %22 = vector.extract_strided_slice %0 {offsets = [0, 3], sizes = [8, 1], strides = [1, 1]} : vector<8x5xi32> to vector<8x1xi32>
    %23 = vector.broadcast %22 : vector<8x1xi32> to vector<8x24xi32>
    %24 = vector.broadcast %1 : vector<1x24xi32> to vector<8x24xi32>
    %25 = arith.cmpi eq, %23, %24 : vector<8x24xi32>
    %26 = arith.extui %25 : vector<8x24xi1> to vector<8x24xi32>
    %27 = arith.sitofp %26 : vector<8x24xi32> to vector<8x24xf32>
    %28 = arith.addf %21, %27 : vector<8x24xf32>
    %29 = vector.extract_strided_slice %0 {offsets = [0, 4], sizes = [8, 1], strides = [1, 1]} : vector<8x5xi32> to vector<8x1xi32>
    %30 = vector.broadcast %29 : vector<8x1xi32> to vector<8x24xi32>
    %31 = vector.broadcast %1 : vector<1x24xi32> to vector<8x24xi32>
    %32 = arith.cmpi eq, %30, %31 : vector<8x24xi32>
    %33 = arith.extui %32 : vector<8x24xi1> to vector<8x24xi32>
    %34 = arith.sitofp %33 : vector<8x24xi32> to vector<8x24xf32>
    %35 = arith.addf %28, %34 : vector<8x24xf32>
    %36 = arith.truncf %35 : vector<8x24xf32> to vector<8x24xbf16>
    %c0_1 = arith.constant 0 : index
    %c0_2 = arith.constant 0 : index
    %37 = vector.load %arg2[%c0_1, %c0_2] : memref<24x128xbf16, #tpu.memory_space<vmem>>, vector<24x128xbf16>
    %cst = arith.constant dense<0.000000e+00> : vector<8x128xf32>
    %38 = tpu.matmul %36, %37, %cst {dimension_numbers = #tpu.dot_dimension_numbers<[1], [0], [0], [1], [0, 0, 1, 1], [], []>} : vector<8x24xbf16>, vector<24x128xbf16>, vector<8x128xf32> -> vector<8x128xf32>
    %c0_3 = arith.constant 0 : index
    %c0_4 = arith.constant 0 : index
    %39 = vector.load %arg3[%c0_3, %c0_4] : memref<8x128xf32, #tpu.memory_space<vmem>>, vector<8x128xf32>
    tpu.vector_store %arg3[%c0_3, %c0_4], %38 {strides = array<i32>} : memref<8x128xf32, #tpu.memory_space<vmem>>, vector<8x128xf32>,
    return
  }
  func.func @transform_0(%arg0: i32) -> (i32, i32) {
    %c0_i32 = arith.constant 0 : i32
    %c0_i32_0 = arith.constant 0 : i32
    return %arg0, %c0_i32 : i32, i32
  }
  func.func @transform_1(%arg0: i32) -> (i32, i32) {
    %c0_i32 = arith.constant 0 : i32
    %c0_i32_0 = arith.constant 0 : i32
    %c0_i32_1 = arith.constant 0 : i32
    return %c0_i32, %c0_i32_0 : i32, i32
  }
  func.func @transform_2(%arg0: i32) -> (i32, i32) {
    %c0_i32 = arith.constant 0 : i32
    %c0_i32_0 = arith.constant 0 : i32
    return %arg0, %c0_i32 : i32, i32
  }
}

module attributes {stable_mosaic.version = 11 : i64} {
  func.func @_fused_embedding_kernel(%arg0: i32, %arg1: memref<8x5xi32, #tpu.memory_space<vmem>>, %arg2: memref<24x128xbf16, #tpu.memory_space<vmem>>, %arg3: memref<8x128xf32, #tpu.memory_space<vmem>>) attributes {dimension_semantics = [#tpu.dimension_semantics<parallel>], iteration_bounds = array<i64: 2>, scalar_prefetch = 0 : i64, scratch_operands = 0 : i64, tpu.core_type = #tpu.core_type<tc>, window_params = [{transform_indices = @transform_0, window_bounds = array<i64: 8, 5>}, {pipeline_mode = #tpu.pipeline_mode<synchronous>, transform_indices = @transform_1, window_bounds = array<i64: 24, 128>}, {transform_indices = @transform_2, window_bounds = array<i64: 8, 128>}]} {
    %c0 = arith.constant 0 : index
    %c0_0 = arith.constant 0 : index
    %0 = vector.load %arg1[%c0, %c0_0] : memref<8x5xi32, #tpu.memory_space<vmem>>, vector<8x5xi32>
    %1 = tpu.iota {dimensions = array<i32: 1>} : vector<1x24xi32>
    %2 = vector.extract_strided_slice %0 {offsets = [0, 0], sizes = [8, 1], strides = [1, 1]} : vector<8x5xi32> to vector<8x1xi32>
    %3 = vector.broadcast %2 : vector<8x1xi32> to vector<8x24xi32>
    %4 = vector.broadcast %1 : vector<1x24xi32> to vector<8x24xi32>
    %5 = arith.cmpi eq, %3, %4 : vector<8x24xi32>
    %6 = arith.extui %5 : vector<8x24xi1> to vector<8x24xi32>
    %7 = arith.sitofp %6 : vector<8x24xi32> to vector<8x24xf32>
    %8 = vector.extract_strided_slice %0 {offsets = [0, 1], sizes = [8, 1], strides = [1, 1]} : vector<8x5xi32> to vector<8x1xi32>
    %9 = vector.broadcast %8 : vector<8x1xi32> to vector<8x24xi32>
    %10 = vector.broadcast %1 : vector<1x24xi32> to vector<8x24xi32>
    %11 = arith.cmpi eq, %9, %10 : vector<8x24xi32>
    %12 = arith.extui %11 : vector<8x24xi1> to vector<8x24xi32>
    %13 = arith.sitofp %12 : vector<8x24xi32> to vector<8x24xf32>
    %14 = arith.addf %7, %13 : vector<8x24xf32>
    %15 = vector.extract_strided_slice %0 {offsets = [0, 2], sizes = [8, 1], strides = [1, 1]} : vector<8x5xi32> to vector<8x1xi32>
    %16 = vector.broadcast %15 : vector<8x1xi32> to vector<8x24xi32>
    %17 = vector.broadcast %1 : vector<1x24xi32> to vector<8x24xi32>
    %18 = arith.cmpi eq, %16, %17 : vector<8x24xi32>
    %19 = arith.extui %18 : vector<8x24xi1> to vector<8x24xi32>
    %20 = arith.sitofp %19 : vector<8x24xi32> to vector<8x24xf32>
    %21 = arith.addf %14, %20 : vector<8x24xf32>
    %22 = vector.extract_strided_slice %0 {offsets = [0, 3], sizes = [8, 1], strides = [1, 1]} : vector<8x5xi32> to vector<8x1xi32>
    %23 = vector.broadcast %22 : vector<8x1xi32> to vector<8x24xi32>
    %24 = vector.broadcast %1 : vector<1x24xi32> to vector<8x24xi32>
    %25 = arith.cmpi eq, %23, %24 : vector<8x24xi32>
    %26 = arith.extui %25 : vector<8x24xi1> to vector<8x24xi32>
    %27 = arith.sitofp %26 : vector<8x24xi32> to vector<8x24xf32>
    %28 = arith.addf %21, %27 : vector<8x24xf32>
    %29 = vector.extract_strided_slice %0 {offsets = [0, 4], sizes = [8, 1], strides = [1, 1]} : vector<8x5xi32> to vector<8x1xi32>
    %30 = vector.broadcast %29 : vector<8x1xi32> to vector<8x24xi32>
    %31 = vector.broadcast %1 : vector<1x24xi32> to vector<8x24xi32>
    %32 = arith.cmpi eq, %30, %31 : vector<8x24xi32>
    %33 = arith.extui %32 : vector<8x24xi1> to vector<8x24xi32>
    %34 = arith.sitofp %33 : vector<8x24xi32> to vector<8x24xf32>
    %35 = arith.addf %28, %34 : vector<8x24xf32>
    %36 = arith.truncf %35 : vector<8x24xf32> to vector<8x24xbf16>
    %c0_1 = arith.constant 0 : index
    %c0_2 = arith.constant 0 : index
    %37 = vector.load %arg2[%c0_1, %c0_2] : memref<24x128xbf16, #tpu.memory_space<vmem>>, vector<24x128xbf16>
    %cst = arith.constant dense<0.000000e+00> : vector<8x128xf32>
    %38 = tpu.matmul %36, %37, %cst {dimension_numbers = #tpu.dot_dimension_numbers<[1], [0], [0], [1], [0, 0, 1, 1], [], []>} : vector<8x24xbf16>, vector<24x128xbf16>, vector<8x128xf32> -> vector<8x128xf32>
    %c0_3 = arith.constant 0 : index
    %c0_4 = arith.constant 0 : index
    %39 = vector.load %arg3[%c0_3, %c0_4] : memref<8x128xf32, #tpu.memory_space<vmem>>, vector<8x128xf32>
    tpu.vector_store %arg3[%c0_3, %c0_4], %38 {strides = array<i32>} : memref<8x128xf32, #tpu.memory_space<vmem>>, vector<8x128xf32>,
    return
  }
  func.func @transform_0(%arg0: i32) -> (i32, i32) {
    %c0_i32 = arith.constant 0 : i32
    %c0_i32_0 = arith.constant 0 : i32
    return %arg0, %c0_i32 : i32, i32
  }
  func.func @transform_1(%arg0: i32) -> (i32, i32) {
    %c0_i32 = arith.constant 0 : i32
    %c0_i32_0 = arith.constant 0 : i32
    %c0_i32_1 = arith.constant 0 : i32
    return %c0_i32, %c0_i32_0 : i32, i32
  }
  func.func @transform_2(%arg0: i32) -> (i32, i32) {
    %c0_i32 = arith.constant 0 : i32
    %c0_i32_0 = arith.constant 0 : i32
    return %arg0, %c0_i32 : i32, i32
  }
}

</mosaic_0001>

<bundles_post_ra>
// kernel: tpu_custom_call.1
= control target key start
LH: loop header
LB: loop body
LE: loop exit
PB: predicated region body
PF: predicated region fallthrough
CT: control target
= control target key end

     0   :  { %7 = vsyncpa [#allocation3], 0  ;;  %s585_s0 = inlined_call_operand.vmem [shape: s32[16,5], index: 0, kind: input, shape index: {}]   ;;  %s586_s1 = inlined_call_operand.vmem [shape: bf16[24,128], index: 1, kind: input, shape index: {}]   ;;  %s587_s2 = inlined_call_operand.hbm [shape: f32[16,128], index: 2, kind: output, shape index: {}]  }
   0x1   :  { %9 = vsyncpa [#allocation3 + $0x1], 0  ;;  %s480_s9 = smov 0   ;;  %s482_s10 = smov 0  }
   0x2   :  { %s484_s11 = smov 0   ;;  %s486_s12 = smov 0  }
   0x3 LB: > { %s501_s13 = sadd.s32 4294967295, %s455_s12   ;;  %s312_s14 = sadd.s32 4294967294, %s455_s12   ;;  %s455_s12 = sphi %s486_s12, %s593_s12   ;;  %s451_s11 = sphi %s484_s11, %s592_s11   ;;  %s447_s10 = sphi %s482_s10, %s591_s10   ;;  %s443_s9 = sphi %s480_s9, %s590_s9  }
   0x4   : > { %s505_s15 = sadd.s32 1, %s455_s12   ;;  %s69_s16 = sadd.s32 1, %s451_s11 }
   0x5   : > { %s66_s17 = ssub.s32 %s455_s12, %s505_s15  ;;  %p79_p0 = scmp.ne.s32.totalorder %s451_s11, %s447_s10 }
   0x6   : > { %p67_p1 = scmp.eq.s32.totalorder %s66_s17, 0  ;;  %p80_p2 = scmp.eq.s32.totalorder %s501_s13, 1 }
   0x7   : > { %p85_p3 = scmp.ne.s32.totalorder %s447_s10, %s443_s9  ;;  %p86_p4 = scmp.eq.s32.totalorder %s312_s14, 1 }
   0x8   : > { %s516_s18 = scalar_select %p67_p1, %s451_s11, %s69_s16  }
   0x9   : > { %p518_p5 = por %p80_p2, %p79_p0  ;;  %p522_p6 = por %p86_p4, %p85_p3 }
   0xa   : > { %p315_p7 = scmp.ge.s32.totalorder %s455_s12, 1  ;;  %p114_p8 = scmp.lt.s32.totalorder %s455_s12, 3 }
   0xc   : > { %p115_p9 = pnand %p315_p7, %p114_p8 }
   0xd   : > { %p135_p10 = scmp.lt.s32.totalorder (!%p115_p9), %s501_s13, 1  ;;  %s132_s30 = sand.u32 (!%p115_p9), 1, %s447_s10  }
   0xe   : > { %118 = sbr.rel (%p115_p9) target bundleno = 374 (0x176), region = 28  ;;  %s316_s3 = sshll.u32 (!%p115_p9), %s132_s30, 3 }
   0xf   : > { %s134_s4 = scalar_lea.vmem (!%p115_p9), [#allocation2], %s316_s3  ;;  %s327_s6 = sshll.u32 (!%p115_p9), %s501_s13, 7 }
  0x10   : > { %s253_s5 = sshll.u32 (!%p115_p9), %s134_s4, 4  ;;  %s546_s14 = scalar_lea.hbm (!%p115_p9), %s587_s2, %s327_s6  ;;  %s541_s5 = int_to_ptr.vmem [resolvable:$true] %s253_s5 }
  0x11   : > { %s240_s16 = scalar_lea.sflag (!%p115_p9), [#allocation3], %s132_s30  ;;  %s395_s17 = scalar_lea.vmem (!%p115_p9), %s541_s5, 128 }
  0x12   : > { %p396_p11 = scmp.ne.s32.totalorder (!%p115_p9), %s541_s5, %s395_s17 }
  0x13   : > { %v457_v0 = vmov 0   ;;  %v458_v1 = vmov 2   ;;  %s136_s21 = scalar_select %p135_p10, %s501_s13, 1  ;;  %v459_v2 = vmov 0.0   ;;  %v393_v4 = vld [vmem:[%s586_s1 + $0x8] ss:$0 sps:$4 sm:$0xff]   ;;  %v141_v10 = vlaneseq }
  0x14   : > { %387 = vset.pattern.permute.xlu0 %v457_v0  ;;  %389 = vset.pattern.permute.xlu1 %v458_v1  ;;  %v460_v5 = vmov 1   ;;  %v461_v6 = vmov 3   ;;  %vm194_vm0 = vcmask 1043456   ;;  %v394_v8 = vld [vmem:[%s586_s1] sm:$0xff]   ;;  %v462_v9 = vmov 4   ;;  %p397_p12 = pnand %p396_p11, %p518_p5  ;;  %s464_s13 = smov [#allocation2]  }
  0x15   : > { %333 = vmatprep.subr.bf16.mxu0 %v459_v2  ;;  %s317_s22 = sshll.u32 %s136_s21, 3  ;;  %v196_v7 = vsel %vm194_vm0, %v393_v4, 0  ;;  %vm463_vm1 = vmmov 0   ;;  %v142_v11 = vand.u32 127, %v141_v10  ;;  %vm190_vm7 = vcmask 195584   ;;  %s399_s21 = sshll.u32 %s464_s13, 4  ;;  %s400_s21 = int_to_ptr.vmem [resolvable:$false] %s399_s21 }
  0x16   : > { %s138_s25 = scalar_lea.vmem %s585_s0, %s317_s22  ;;  %334 = vmatpush3.bf16.msra.mxu0 %v196_v7  ;;  %337 = vmatprep.mubr.msk.bf16.mxu0 %vm463_vm1, %v459_v2  ;;  %p398_p13 = pneg %p397_p12 }
  0x17   : > { %v140_v3 = vld [vmem:[%s138_s25] sm:$0xff]  ;;  %335 = vmatprep.subr.bf16.mxu0 %v459_v2  ;;  %s401_s22 = scalar_lea.vmem %s400_s21, 256  ;;  %p402_p0 = scmp.lt.s32.totalorder %s541_s5, %s400_s21 }
  0x18   : > { %144 = vperm.xlu0 %387, %v140_v3   ;;  %157 = vperm.xlu1 %389, %v140_v3   ;;  %p403_p1 = scmp.lt.s32.totalorder %s401_s22, %s395_s17 }
  0x1a   : > { %336 = vmatpush3.bf16.msra.mxu0 %v394_v8  ;;  %p404_p2 = por %p403_p1, %p402_p0 }
  0x1c   : > { %388 = vset.pattern.permute.xlu0 %v460_v5  ;;  %390 = vset.pattern.permute.xlu1 %v461_v6  ;;  %p405_p3 = pnand %p404_p2, %p398_p13 }
  0x1d   : > { %150 = vperm.xlu0 %388, %v140_v3   ;;  %164 = vperm.xlu1 %390, %v140_v3  }
  0x21   : > { %391 = vset.pattern.permute.xlu1 %v462_v9  ;;  %392 = vset.pattern.permute.xlu0 %v462_v9 }
  0x22   : > { %171 = vperm.xlu1 %391, %v140_v3  }
  0x93   : > { %v145_v12 = vpop.permute.xlu0 %144  ;;  %v158_v13 = vpop.permute.xlu1 %157 }
  0x94   : > { %vm146_vm2 = vcmp.eq.s32.totalorder %v145_v12, %v142_v11  ;;  %vm159_vm3 = vcmp.eq.s32.totalorder %v158_v13, %v142_v11 }
  0x95   : > { %v318_v16 = vsel %vm146_vm2, 1.0, %v459_v2  ;;  %v320_v19 = vsel %vm159_vm3, 1.0, %v459_v2 }
  0x98   : > { %v151_v14 = vpop.permute.xlu0 %150  ;;  %v165_v15 = vpop.permute.xlu1 %164 }
  0x99   : > { %vm152_vm4 = vcmp.eq.s32.totalorder %v151_v14, %v142_v11  ;;  %vm166_vm5 = vcmp.eq.s32.totalorder %v165_v15, %v142_v11 }
  0x9a   : > { %v319_v17 = vsel %vm152_vm4, 1.0, %v459_v2  ;;  %v321_v22 = vsel %vm166_vm5, 1.0, %v459_v2 }
  0x9b   : > { %v155_v18 = vadd.f32 %v319_v17, %v318_v16 }
  0x9d   : > { %v162_v20 = vadd.f32 %v320_v19, %v155_v18  ;;  %v172_v21 = vpop.permute.xlu1 %171 }
  0x9e   : > { %vm173_vm6 = vcmp.eq.s32.totalorder %v172_v21, %v142_v11 }
  0x9f   : > { %v169_v23 = vadd.f32 %v321_v22, %v162_v20  ;;  %v322_v24 = vsel %vm173_vm6, 1.0, %v459_v2 }
  0xa1   : > { %v176_v25 = vadd.f32 %v322_v24, %v169_v23 }
  0xa3   : > { %v177_v26 = vpack.c.bf16 %v176_v25, %v176_v25 }
  0xa5   : > { %338 = vmatmul.mubr.msk.bf16.vlgmr.msra.gmra.mxu0 %vm190_vm7, %v177_v26 }
 0x165   : > { %v232_v27 = vpop.f32.mrf.mxu0 }
 0x166   : > { %238 = vst [vmem:[%s134_s4] sm:$0xff] %v232_v27 }
 0x167   : > { %v339_v28 = vpop.f32.mrf.mxu0 }
 0x168   : > { %408 = shalt.err (!%p405_p3)
}
 0x169   : > { %s409_s23 = scalar_lea.hbm %s546_s14, 128  ;;  %s413_s26 = scalar_lea.hbm %s587_s2, 256 }
 0x16a   : > { %p410_p4 = scmp.ne.s32.totalorder %s546_s14, %s409_s23  ;;  %p414_p9 = scmp.lt.s32.totalorder %s546_s14, %s587_s2 }
 0x16b   : > { %p415_p10 = scmp.lt.s32.totalorder %s413_s26, %s409_s23 }
 0x16c   : > { %p411_p7 = pnand %p410_p4, %p518_p5 }
 0x16d   : > { %p416_p11 = por %p415_p10, %p414_p9 }
 0x16e   : > { %p412_p8 = pneg %p411_p7 }
 0x170   : > { %p417_p12 = pnand %p416_p11, %p412_p8 }
 0x172   : > { %420 = shalt.err (!%p417_p12)
}
 0x173   : > { %341 = dma.vmem_to_hbm [thread:$0]  (%p518_p5), %s541_s5, 128, %s546_s14, %s240_s16   ;;  %v235_v29 = vpop.f32.mrf.mxu0 }
 0x175   : > { %v340_v30 = vpop.f32.mrf.mxu0 }
 0x176 PF: > { %p347_p13 = scmp.ge.s32.totalorder %s455_s12, 2  ;;  %s265_s29 = sand.u32 1, %s443_s9  }
 0x177   : > { %s266_s30 = scalar_lea.sflag [#allocation3], %s265_s29 }
 0x178   : > { %p344_p0 = pnand %p347_p13, %p522_p6 }
 0x17a   : > { %p345_p1 = pneg %p344_p0 }
 0x17c   : > { %438 = dma.done.wait (%p345_p1), %s266_s30, 128  }
 0x17d   : > { %440 = vsyncadd (%p345_p1), %s266_s30, 4294967168  ;;  %p12_p5 = scmp.ge.s32.totalorder %s505_s15, 4   ;;  %s590_s9 = smov %s447_s10 }
 0x17e   : > { %s591_s10 = smov %s451_s11  ;;  %s592_s11 = smov %s516_s18 }
 0x17f   : > { %s593_s12 = smov %s505_s15  ;;  %14 = sbr.rel (!%p12_p5) target bundleno = 3 (0x3), region = 63 }
 0x184   :  { %271 = vsyncpa [#allocation3], 1 }
 0x185   :  { %273 = vsyncpa [#allocation3 + $0x1], 1 }

// kernel: tpu_custom_call.1
= control target key start
LH: loop header
LB: loop body
LE: loop exit
PB: predicated region body
PF: predicated region fallthrough
CT: control target
= control target key end

     0   :  { %7 = vsyncpa [#allocation3], 0  ;;  %s585_s0 = inlined_call_operand.vmem [shape: s32[16,5], index: 0, kind: input, shape index: {}]   ;;  %s586_s1 = inlined_call_operand.vmem [shape: bf16[24,128], index: 1, kind: input, shape index: {}]   ;;  %s587_s2 = inlined_call_operand.hbm [shape: f32[16,128], index: 2, kind: output, shape index: {}]  }
   0x1   :  { %9 = vsyncpa [#allocation3 + $0x1], 0  ;;  %s480_s9 = smov 0   ;;  %s482_s10 = smov 0  }
   0x2   :  { %s484_s11 = smov 0   ;;  %s486_s12 = smov 0  }
   0x3 LB: > { %s501_s13 = sadd.s32 4294967295, %s455_s12   ;;  %s312_s14 = sadd.s32 4294967294, %s455_s12   ;;  %s455_s12 = sphi %s486_s12, %s593_s12   ;;  %s451_s11 = sphi %s484_s11, %s592_s11   ;;  %s447_s10 = sphi %s482_s10, %s591_s10   ;;  %s443_s9 = sphi %s480_s9, %s590_s9  }
   0x4   : > { %s505_s15 = sadd.s32 1, %s455_s12   ;;  %s69_s16 = sadd.s32 1, %s451_s11 }
   0x5   : > { %s66_s17 = ssub.s32 %s455_s12, %s505_s15  ;;  %p79_p0 = scmp.ne.s32.totalorder %s451_s11, %s447_s10 }
   0x6   : > { %p67_p1 = scmp.eq.s32.totalorder %s66_s17, 0  ;;  %p80_p2 = scmp.eq.s32.totalorder %s501_s13, 1 }
   0x7   : > { %p85_p3 = scmp.ne.s32.totalorder %s447_s10, %s443_s9  ;;  %p86_p4 = scmp.eq.s32.totalorder %s312_s14, 1 }
   0x8   : > { %s516_s18 = scalar_select %p67_p1, %s451_s11, %s69_s16  }
   0x9   : > { %p518_p5 = por %p80_p2, %p79_p0  ;;  %p522_p6 = por %p86_p4, %p85_p3 }
   0xa   : > { %p315_p7 = scmp.ge.s32.totalorder %s455_s12, 1  ;;  %p114_p8 = scmp.lt.s32.totalorder %s455_s12, 3 }
   0xc   : > { %p115_p9 = pnand %p315_p7, %p114_p8 }
   0xd   : > { %p135_p10 = scmp.lt.s32.totalorder (!%p115_p9), %s501_s13, 1  ;;  %s132_s30 = sand.u32 (!%p115_p9), 1, %s447_s10  }
   0xe   : > { %118 = sbr.rel (%p115_p9) target bundleno = 374 (0x176), region = 28  ;;  %s316_s3 = sshll.u32 (!%p115_p9), %s132_s30, 3 }
   0xf   : > { %s134_s4 = scalar_lea.vmem (!%p115_p9), [#allocation2], %s316_s3  ;;  %s327_s6 = sshll.u32 (!%p115_p9), %s501_s13, 7 }
  0x10   : > { %s253_s5 = sshll.u32 (!%p115_p9), %s134_s4, 4  ;;  %s546_s14 = scalar_lea.hbm (!%p115_p9), %s587_s2, %s327_s6  ;;  %s541_s5 = int_to_ptr.vmem [resolvable:$true] %s253_s5 }
  0x11   : > { %s240_s16 = scalar_lea.sflag (!%p115_p9), [#allocation3], %s132_s30  ;;  %s395_s17 = scalar_lea.vmem (!%p115_p9), %s541_s5, 128 }
  0x12   : > { %p396_p11 = scmp.ne.s32.totalorder (!%p115_p9), %s541_s5, %s395_s17 }
  0x13   : > { %v457_v0 = vmov 0   ;;  %v458_v1 = vmov 2   ;;  %s136_s21 = scalar_select %p135_p10, %s501_s13, 1  ;;  %v459_v2 = vmov 0.0   ;;  %v393_v4 = vld [vmem:[%s586_s1 + $0x8] ss:$0 sps:$4 sm:$0xff]   ;;  %v141_v10 = vlaneseq }
  0x14   : > { %387 = vset.pattern.permute.xlu0 %v457_v0  ;;  %389 = vset.pattern.permute.xlu1 %v458_v1  ;;  %v460_v5 = vmov 1   ;;  %v461_v6 = vmov 3   ;;  %vm194_vm0 = vcmask 1043456   ;;  %v394_v8 = vld [vmem:[%s586_s1] sm:$0xff]   ;;  %v462_v9 = vmov 4   ;;  %p397_p12 = pnand %p396_p11, %p518_p5  ;;  %s464_s13 = smov [#allocation2]  }
  0x15   : > { %333 = vmatprep.subr.bf16.mxu0 %v459_v2  ;;  %s317_s22 = sshll.u32 %s136_s21, 3  ;;  %v196_v7 = vsel %vm194_vm0, %v393_v4, 0  ;;  %vm463_vm1 = vmmov 0   ;;  %v142_v11 = vand.u32 127, %v141_v10  ;;  %vm190_vm7 = vcmask 195584   ;;  %s399_s21 = sshll.u32 %s464_s13, 4  ;;  %s400_s21 = int_to_ptr.vmem [resolvable:$false] %s399_s21 }
  0x16   : > { %s138_s25 = scalar_lea.vmem %s585_s0, %s317_s22  ;;  %334 = vmatpush3.bf16.msra.mxu0 %v196_v7  ;;  %337 = vmatprep.mubr.msk.bf16.mxu0 %vm463_vm1, %v459_v2  ;;  %p398_p13 = pneg %p397_p12 }
  0x17   : > { %v140_v3 = vld [vmem:[%s138_s25] sm:$0xff]  ;;  %335 = vmatprep.subr.bf16.mxu0 %v459_v2  ;;  %s401_s22 = scalar_lea.vmem %s400_s21, 256  ;;  %p402_p0 = scmp.lt.s32.totalorder %s541_s5, %s400_s21 }
  0x18   : > { %144 = vperm.xlu0 %387, %v140_v3   ;;  %157 = vperm.xlu1 %389, %v140_v3   ;;  %p403_p1 = scmp.lt.s32.totalorder %s401_s22, %s395_s17 }
  0x1a   : > { %336 = vmatpush3.bf16.msra.mxu0 %v394_v8  ;;  %p404_p2 = por %p403_p1, %p402_p0 }
  0x1c   : > { %388 = vset.pattern.permute.xlu0 %v460_v5  ;;  %390 = vset.pattern.permute.xlu1 %v461_v6  ;;  %p405_p3 = pnand %p404_p2, %p398_p13 }
  0x1d   : > { %150 = vperm.xlu0 %388, %v140_v3   ;;  %164 = vperm.xlu1 %390, %v140_v3  }
  0x21   : > { %391 = vset.pattern.permute.xlu1 %v462_v9  ;;  %392 = vset.pattern.permute.xlu0 %v462_v9 }
  0x22   : > { %171 = vperm.xlu1 %391, %v140_v3  }
  0x93   : > { %v145_v12 = vpop.permute.xlu0 %144  ;;  %v158_v13 = vpop.permute.xlu1 %157 }
  0x94   : > { %vm146_vm2 = vcmp.eq.s32.totalorder %v145_v12, %v142_v11  ;;  %vm159_vm3 = vcmp.eq.s32.totalorder %v158_v13, %v142_v11 }
  0x95   : > { %v318_v16 = vsel %vm146_vm2, 1.0, %v459_v2  ;;  %v320_v19 = vsel %vm159_vm3, 1.0, %v459_v2 }
  0x98   : > { %v151_v14 = vpop.permute.xlu0 %150  ;;  %v165_v15 = vpop.permute.xlu1 %164 }
  0x99   : > { %vm152_vm4 = vcmp.eq.s32.totalorder %v151_v14, %v142_v11  ;;  %vm166_vm5 = vcmp.eq.s32.totalorder %v165_v15, %v142_v11 }
  0x9a   : > { %v319_v17 = vsel %vm152_vm4, 1.0, %v459_v2  ;;  %v321_v22 = vsel %vm166_vm5, 1.0, %v459_v2 }
  0x9b   : > { %v155_v18 = vadd.f32 %v319_v17, %v318_v16 }
  0x9d   : > { %v162_v20 = vadd.f32 %v320_v19, %v155_v18  ;;  %v172_v21 = vpop.permute.xlu1 %171 }
  0x9e   : > { %vm173_vm6 = vcmp.eq.s32.totalorder %v172_v21, %v142_v11 }
  0x9f   : > { %v169_v23 = vadd.f32 %v321_v22, %v162_v20  ;;  %v322_v24 = vsel %vm173_vm6, 1.0, %v459_v2 }
  0xa1   : > { %v176_v25 = vadd.f32 %v322_v24, %v169_v23 }
  0xa3   : > { %v177_v26 = vpack.c.bf16 %v176_v25, %v176_v25 }
  0xa5   : > { %338 = vmatmul.mubr.msk.bf16.vlgmr.msra.gmra.mxu0 %vm190_vm7, %v177_v26 }
 0x165   : > { %v232_v27 = vpop.f32.mrf.mxu0 }
 0x166   : > { %238 = vst [vmem:[%s134_s4] sm:$0xff] %v232_v27 }
 0x167   : > { %v339_v28 = vpop.f32.mrf.mxu0 }
 0x168   : > { %408 = shalt.err (!%p405_p3)
}
 0x169   : > { %s409_s23 = scalar_lea.hbm %s546_s14, 128  ;;  %s413_s26 = scalar_lea.hbm %s587_s2, 256 }
 0x16a   : > { %p410_p4 = scmp.ne.s32.totalorder %s546_s14, %s409_s23  ;;  %p414_p9 = scmp.lt.s32.totalorder %s546_s14, %s587_s2 }
 0x16b   : > { %p415_p10 = scmp.lt.s32.totalorder %s413_s26, %s409_s23 }
 0x16c   : > { %p411_p7 = pnand %p410_p4, %p518_p5 }
 0x16d   : > { %p416_p11 = por %p415_p10, %p414_p9 }
 0x16e   : > { %p412_p8 = pneg %p411_p7 }
 0x170   : > { %p417_p12 = pnand %p416_p11, %p412_p8 }
 0x172   : > { %420 = shalt.err (!%p417_p12)
}
 0x173   : > { %341 = dma.vmem_to_hbm [thread:$0]  (%p518_p5), %s541_s5, 128, %s546_s14, %s240_s16   ;;  %v235_v29 = vpop.f32.mrf.mxu0 }
 0x175   : > { %v340_v30 = vpop.f32.mrf.mxu0 }
 0x176 PF: > { %p347_p13 = scmp.ge.s32.totalorder %s455_s12, 2  ;;  %s265_s29 = sand.u32 1, %s443_s9  }
 0x177   : > { %s266_s30 = scalar_lea.sflag [#allocation3], %s265_s29 }
 0x178   : > { %p344_p0 = pnand %p347_p13, %p522_p6 }
 0x17a   : > { %p345_p1 = pneg %p344_p0 }
 0x17c   : > { %438 = dma.done.wait (%p345_p1), %s266_s30, 128  }
 0x17d   : > { %440 = vsyncadd (%p345_p1), %s266_s30, 4294967168  ;;  %p12_p5 = scmp.ge.s32.totalorder %s505_s15, 4   ;;  %s590_s9 = smov %s447_s10 }
 0x17e   : > { %s591_s10 = smov %s451_s11  ;;  %s592_s11 = smov %s516_s18 }
 0x17f   : > { %s593_s12 = smov %s505_s15  ;;  %14 = sbr.rel (!%p12_p5) target bundleno = 3 (0x3), region = 63 }
 0x184   :  { %271 = vsyncpa [#allocation3], 1 }
 0x185   :  { %273 = vsyncpa [#allocation3 + $0x1], 1 }

</bundles_post_ra>
